<compile_context>
chip_gen: v7x
topology: tpu7x:2x2x1
jax: 0.10.0
libtpu: 0.0.40
codegen_flags: <defaults>
</compile_context>

<pallas_src>
from functools import partial

import jax
import jax.numpy as jnp
from jax.experimental import pallas as pl
from jax.experimental.pallas import tpu as pltpu


def _identity_kernel(x_ref, o_ref):
    # Whole-tile assignment: Mosaic lowers this as bulk moves (no per-row
    # vld/vst loops), keeping the kernel purely HBM-bandwidth bound on all
    # generations (incl. v5e's single vector-store slot).
    o_ref[...] = x_ref[...]


def _pick_lane(total):
    """Largest lane-dense last-dim (multiple of 128) that divides `total`."""
    for lane in (1024, 2048, 512, 256, 128):
        if total % lane == 0:
            return lane
    return None


def _pick_row_tile(rows, itemsize):
    """Row-tile that divides `rows`, respects sublane packing, caps VMEM use."""
    # Sublane packing: 8 rows for 4-byte, 16 for 2-byte, 32 for 1-byte dtypes.
    pack = max(8, 32 // max(int(itemsize), 1))
    for tm in (512, 256, 128, 64, 32):
        if tm % pack == 0 and rows % tm == 0:
            return tm
    return rows  # full dim is always a legal block shape


@partial(jax.jit)
def abstract_architecture_forward(x):
    """Pallas equivalent of AbstractArchitecture.forward (identity)."""
    orig_shape = x.shape
    total = int(x.size)
    if total == 0:
        return x

    lane = _pick_lane(total)
    if lane is None:
        # Size not a multiple of 128: fall back to a single full-array block
        # (still an exact identity copy, still aliased).
        lane = total
        rows = 1
        tm = 1
    else:
        rows = total // lane
        tm = _pick_row_tile(rows, x.dtype.itemsize)

    x2d = x.reshape(rows, lane)
    grid = (rows // tm,)

    out2d = pl.pallas_call(
        _identity_kernel,
        out_shape=jax.ShapeDtypeStruct((rows, lane), x.dtype),
        grid=grid,
        in_specs=[pl.BlockSpec((tm, lane), lambda i: (i, 0))],
        out_specs=pl.BlockSpec((tm, lane), lambda i: (i, 0)),
        # Output aliases the input buffer: no extra HBM allocation for the
        # identity result.
        input_output_aliases={0: 0},
        compiler_params=pltpu.CompilerParams(
            dimension_semantics=("parallel",),
        ),
    )(x2d)

    return out2d.reshape(orig_shape)


if __name__ == "__main__":
    key = jax.random.PRNGKey(0)
    # Small NCHW input consistent with a conv-style module:
    # batch=2, channels=4, 16x16 spatial.
    x = jax.random.normal(key, (2, 4, 16, 16), dtype=jnp.float32)

    y = abstract_architecture_forward(x)
    y = jax.block_until_ready(y)

    assert y.shape == x.shape and y.dtype == x.dtype
    assert bool(jnp.all(y == x))

    print("KERNEL_OK")
</pallas_src>

<mosaic_0001>
module attributes {stable_mosaic.version = 11 : i64} {
  func.func @_identity_kernel(%arg0: i32, %arg1: memref<2x1024xf32, #tpu.memory_space<vmem>>, %arg2: memref<2x1024xf32, #tpu.memory_space<vmem>>) attributes {dimension_semantics = [#tpu.dimension_semantics<parallel>], iteration_bounds = array<i64: 1>, scalar_prefetch = 0 : i64, scratch_operands = 0 : i64, tpu.core_type = #tpu.core_type<tc>, window_params = [{transform_indices = @transform_0, window_bounds = array<i64: 2, 1024>}, {transform_indices = @transform_1, window_bounds = array<i64: 2, 1024>}]} {
    %c0 = arith.constant 0 : index
    %c0_0 = arith.constant 0 : index
    %0 = vector.load %arg1[%c0, %c0_0] : memref<2x1024xf32, #tpu.memory_space<vmem>>, vector<2x1024xf32>
    %c0_1 = arith.constant 0 : index
    %c0_2 = arith.constant 0 : index
    %1 = vector.load %arg2[%c0_1, %c0_2] : memref<2x1024xf32, #tpu.memory_space<vmem>>, vector<2x1024xf32>
    tpu.vector_store %arg2[%c0_1, %c0_2], %0 {strides = array<i32>} : memref<2x1024xf32, #tpu.memory_space<vmem>>, vector<2x1024xf32>,
    return
  }
  func.func @transform_0(%arg0: i32) -> (i32, i32) {
    %c0_i32 = arith.constant 0 : i32
    %c0_i32_0 = arith.constant 0 : i32
    return %arg0, %c0_i32 : i32, i32
  }
  func.func @transform_1(%arg0: i32) -> (i32, i32) {
    %c0_i32 = arith.constant 0 : i32
    %c0_i32_0 = arith.constant 0 : i32
    return %arg0, %c0_i32 : i32, i32
  }
}

</mosaic_0001>

<bundles_post_ra>
// kernel: abstract_architecture_forward.1
= control target key start
LH: loop header
LB: loop body
LE: loop exit
PB: predicated region body
PF: predicated region fallthrough
CT: control target
= control target key end

     0   :  { %s38_s0 = inlined_call_operand.vmem [shape: f32[2,1024], index: 0, kind: input, shape index: {}, may-alias: {0,1}]   ;;  %s39_s1 = inlined_call_operand.vmem [shape: f32[2,1024], index: 1, kind: output, shape index: {}, may-alias: {0,1}]  }
   0x1   :  { %v8_v0 = vld [vmem:[%s38_s0] sm:$0xff]  ;;  %v9_v1 = vld [vmem:[%s38_s0 + $0x8] sm:$0xff] }
   0x2   :  { %10 = vst [vmem:[%s39_s1] sm:$0xff] %v8_v0  ;;  %11 = vst [vmem:[%s39_s1 + $0x8] sm:$0xff] %v9_v1 }

</bundles_post_ra>
